<compile_context>
chip_gen: v6e
topology: v6e:2x2x1
jax: 0.10.0
libtpu: 0.0.40
codegen_flags: <defaults>
</compile_context>

<pallas_src>
import functools

import jax
import jax.numpy as jnp
from jax.experimental import pallas as pl
from jax.experimental.pallas import tpu as pltpu


# ----------------------------------------------------------------------------
# Resident-centers path: one-hot gather on the MXU, no manual DMAs.
# ----------------------------------------------------------------------------
def _center_loss_resident_kernel(labels_ref, x_ref, centers_ref, out_ref, *,
                                 tb, batch):
    """labels_ref: VMEM (tb,1) i32 | x_ref: VMEM (tb,D) f32
    centers_ref: VMEM (C,D) f32 (resident across the grid) | out_ref: (1,8,128)"""
    pid = pl.program_id(0)
    c = centers_ref[...]                                   # (C, D), resident
    num_classes = c.shape[0]

    labels = labels_ref[...]                               # (tb, 1) int32
    class_iota = jax.lax.broadcasted_iota(jnp.int32, (tb, num_classes), 1)
    onehot = (labels == class_iota).astype(jnp.float32)    # (tb, C)

    # Gather centers[labels] with a one-hot matmul on the otherwise-idle MXU.
    gathered = jnp.dot(onehot, c, preferred_element_type=jnp.float32)  # (tb, D)

    diff = x_ref[...] - gathered                           # VPU, (tb, D)
    d = jnp.sum(diff * diff, axis=1, keepdims=True)        # (tb, 1)
    d = jnp.clip(d, 1e-12, 1.0e12)                         # per-sample clamp (torch)

    # Mask rows that only exist because of padding to a tile multiple.
    row = pid * tb + jax.lax.broadcasted_iota(jnp.int32, (tb, 1), 0)
    d = jnp.where(row < batch, d, 0.0)

    # Per-tile partial sum, broadcast over one full f32 vreg (unmasked store).
    tile_sum = jnp.sum(d)
    out_ref[...] = jnp.zeros(out_ref.shape, out_ref.dtype) + tile_sum


# ----------------------------------------------------------------------------
# HBM-gather fallback: centers too large for VMEM. Per-row DMAs, prefetched
# one tile ahead, one DMA semaphore per slot with an aggregate byte-count wait.
# ----------------------------------------------------------------------------
def _center_loss_gather_kernel(labels_ref, x_ref, centers_hbm, out_ref,
                               c_buf, sems, *, tb, batch):
    """labels_ref: SMEM (bp,) i32 (scalar prefetch) | x_ref: VMEM (tb,D) f32
    centers_hbm: HBM (C,D) f32 | out_ref: VMEM (1,8,128) f32
    c_buf: VMEM (2,tb,D) f32 | sems: DMA semaphores (2,)"""
    pid = pl.program_id(0)
    nsteps = pl.num_programs(0)

    def start_gather(tile, slot):
        base = tile * tb
        # TODO(synk): dedupe gathers per tile when B >> C (sort/bucket labels
        # in the wrapper and gather each needed center row once).
        for r in range(tb):
            lbl = labels_ref[base + r]
            pltpu.make_async_copy(
                centers_hbm.at[pl.ds(lbl, 1), :],
                c_buf.at[slot, pl.ds(r, 1), :],
                sems.at[slot],                 # all rows share one semaphore
            ).start()

    # Prime slot 0 on the first step.
    @pl.when(pid == 0)
    def _():
        start_gather(0, 0)

    # Prefetch next tile's gathers into the other slot while this tile computes.
    @pl.when(pid + 1 < nsteps)
    def _():
        start_gather(pid + 1, (pid + 1) % 2)

    slot = pid % 2
    # Aggregate wait: DMA semaphores count bytes, so waiting on the full
    # (tb, D) slot releases once all tb row copies have landed.
    pltpu.make_async_copy(c_buf.at[slot], c_buf.at[slot], sems.at[slot]).wait()

    diff = x_ref[...] - c_buf[slot]                        # (tb, D)
    d = jnp.sum(diff * diff, axis=1, keepdims=True)        # (tb, 1)
    d = jnp.clip(d, 1e-12, 1.0e12)
    row = pid * tb + jax.lax.broadcasted_iota(jnp.int32, (tb, 1), 0)
    d = jnp.where(row < batch, d, 0.0)                     # padded rows: wasted
                                                           # gathers, zero loss
    tile_sum = jnp.sum(d)
    out_ref[...] = jnp.zeros(out_ref.shape, out_ref.dtype) + tile_sum


# ----------------------------------------------------------------------------
# Wrapper
# ----------------------------------------------------------------------------
def _round_up(a, m):
    return ((a + m - 1) // m) * m


def _vmem_capacity_bytes():
    try:
        return int(pltpu.get_tpu_info().vmem_capacity_bytes)
    except Exception:
        return 64 * 1024 * 1024        # conservative default (v7x per-core)


def center_loss(x, centers, labels, *, max_tb=256, force_hbm_gather=False):
    """x: (B, D) f32, centers: (C, D) f32, labels: (B,) int -> scalar f32."""
    x = jnp.asarray(x, jnp.float32)
    centers = jnp.asarray(centers, jnp.float32)
    labels = jnp.asarray(labels, jnp.int32)
    B, D = x.shape
    C, D2 = centers.shape
    assert D == D2

    # ---- tile-size / path selection against this generation's VMEM budget ----
    vmem_cap = _vmem_capacity_bytes()
    budget = int(vmem_cap * 0.7)

    bp8 = _round_up(B, 8)
    tb = min(_round_up(max_tb, 8), bp8)
    # Keep >= 2 grid steps when possible so "parallel" can use both v7x cores.
    if bp8 >= 16 and -(-bp8 // tb) < 2:
        tb = max(8, _round_up(-(-bp8 // 2), 8))

    centers_resident_bytes = 2 * 4 * C * D       # block may be double-buffered
    use_resident = (not force_hbm_gather) and (
        centers_resident_bytes <= int(budget * 0.6))

    def step_bytes(tb_):
        per_step = 2 * 4 * tb_ * D               # x tile, double buffered
        per_step += 2 * 4 * tb_                  # labels column (resident path)
        per_step += (centers_resident_bytes if use_resident
                     else 2 * 4 * tb_ * D)       # resident centers OR c_buf
        per_step += 2 * 4 * 8 * 128              # per-tile partial-sum blocks
        return per_step

    while tb > 8 and step_bytes(tb) > budget:
        tb = max(8, _round_up(max(tb // 2, 8), 8))

    bp = _round_up(B, tb)
    grid = bp // tb
    vmem_limit = min(int(0.9 * vmem_cap),
                     max(step_bytes(tb) + (4 << 20), 32 << 20))

    x_p = x
    labels_p = labels
    if bp != B:
        x_p = jnp.pad(x_p, ((0, bp - B), (0, 0)))
        labels_p = jnp.pad(labels_p, (0, bp - B))   # class 0: valid index

    out_shape = jax.ShapeDtypeStruct((grid, 8, 128), jnp.float32)

    if use_resident:
        # TODO(synk): for very small D (< 128) lane utilization of the (tb, D)
        # tiles is partial; a transposed (D, tb) layout would pack lanes fully.
        kernel = functools.partial(_center_loss_resident_kernel, tb=tb, batch=B)
        cost = pl.CostEstimate(
            flops=2 * bp * C * D + 3 * bp * D,
            bytes_accessed=4 * (bp * D + C * D + bp + grid * 8 * 128),
            transcendentals=0)
        partials = pl.pallas_call(
            kernel,
            out_shape=out_shape,
            grid_spec=pltpu.PrefetchScalarGridSpec(
                num_scalar_prefetch=0,
                grid=(grid,),
                in_specs=[
                    pl.BlockSpec((tb, 1), lambda i: (i, 0)),    # labels column
                    pl.BlockSpec((tb, D), lambda i: (i, 0)),    # x tile
                    pl.BlockSpec((C, D), lambda i: (0, 0)),     # resident centers
                ],
                out_specs=pl.BlockSpec((1, 8, 128), lambda i: (i, 0, 0)),
            ),
            compiler_params=pltpu.CompilerParams(
                dimension_semantics=("parallel",),
                vmem_limit_bytes=vmem_limit),
            cost_estimate=cost,
        )(labels_p.reshape(bp, 1), x_p, centers)
    else:
        kernel = functools.partial(_center_loss_gather_kernel, tb=tb, batch=B)
        cost = pl.CostEstimate(
            flops=3 * bp * D,
            bytes_accessed=4 * (2 * bp * D + bp + grid * 8 * 128),
            transcendentals=0)
        partials = pl.pallas_call(
            kernel,
            out_shape=out_shape,
            grid_spec=pltpu.PrefetchScalarGridSpec(
                num_scalar_prefetch=1,                          # labels -> SMEM
                grid=(grid,),
                in_specs=[
                    pl.BlockSpec((tb, D), lambda i, lbl: (i, 0)),   # x tile
                    pl.BlockSpec(memory_space=pl.ANY),              # centers in HBM
                ],
                out_specs=pl.BlockSpec((1, 8, 128), lambda i, lbl: (i, 0, 0)),
                scratch_shapes=[
                    pltpu.VMEM((2, tb, D), jnp.float32),   # double-buffered gather
                    pltpu.SemaphoreType.DMA((2,)),         # one semaphore per slot
                ],
            ),
            compiler_params=pltpu.CompilerParams(
                # Cross-step prefetch makes iterations order-dependent, so this
                # path must be "arbitrary" (no megacore split).
                dimension_semantics=("arbitrary",),
                vmem_limit_bytes=vmem_limit),
            cost_estimate=cost,
        )(labels_p, x_p, centers)

    tile_sums = partials[:, 0, 0]
    # clamp(min=1e-12) is applied AFTER masking in the reference, so each of
    # the B*(C-1) masked-out zeros contributes 1e-12 to the un-normalized sum.
    correction = jnp.float32(B) * jnp.float32(C - 1) * jnp.float32(1e-12)
    return (jnp.sum(tile_sums) + correction) / jnp.float32(B)


def center_loss_ref(x, centers, labels):
    """Pure-JAX reference mirroring the PyTorch forward exactly."""
    B = x.shape[0]
    C = centers.shape[0]
    distmat = (
        jnp.sum(x ** 2, axis=1, keepdims=True)
        + jnp.sum(centers ** 2, axis=1)[None, :]
        - 2.0 * x @ centers.T
    )
    mask = (labels[:, None] == jnp.arange(C)[None, :]).astype(jnp.float32)
    dist = distmat * mask
    return jnp.sum(jnp.clip(dist, 1e-12, 1.0e12)) / B


if __name__ == "__main__":
    num_classes = 10
    feat_dim = 32
    batch = 50          # deliberately not a tile multiple: exercises padding/mask

    key = jax.random.PRNGKey(0)
    k_x, k_c, k_l = jax.random.split(key, 3)

    # Deterministic stand-in for the torch.randn nn.Parameter centers.
    centers = jax.random.normal(k_c, (num_classes, feat_dim), dtype=jnp.float32)
    x = jax.random.normal(k_x, (batch, feat_dim), dtype=jnp.float32)
    labels = jax.random.randint(k_l, (batch,), 0, num_classes, dtype=jnp.int32)

    ref = center_loss_ref(x, centers, labels)

    # Fast path: resident centers + one-hot MXU gather.
    loss_resident = jax.block_until_ready(center_loss(x, centers, labels))
    assert jnp.allclose(loss_resident, ref, rtol=1e-4, atol=1e-4), (loss_resident, ref)

    # Large-num_classes fallback path: HBM gather with prefetch (forced here).
    loss_gather = jax.block_until_ready(
        center_loss(x, centers, labels, force_hbm_gather=True))
    assert jnp.allclose(loss_gather, ref, rtol=1e-4, atol=1e-4), (loss_gather, ref)

    print("KERNEL_OK")
</pallas_src>

<mosaic_0001>
module attributes {stable_mosaic.version = 11 : i64} {
  func.func @_center_loss_resident_kernel(%arg0: i32, %arg1: memref<32x1xi32, #tpu.memory_space<vmem>>, %arg2: memref<32x32xf32, #tpu.memory_space<vmem>>, %arg3: memref<10x32xf32, #tpu.memory_space<vmem>>, %arg4: memref<1x8x128xf32, #tpu.memory_space<vmem>>) attributes {dimension_semantics = [#tpu.dimension_semantics<parallel>], iteration_bounds = array<i64: 2>, scalar_prefetch = 0 : i64, scratch_operands = 0 : i64, tpu.core_type = #tpu.core_type<tc>, window_params = [{transform_indices = @transform_0, window_bounds = array<i64: 32, 1>}, {transform_indices = @transform_1, window_bounds = array<i64: 32, 32>}, {pipeline_mode = #tpu.pipeline_mode<synchronous>, transform_indices = @transform_2, window_bounds = array<i64: 10, 32>}, {transform_indices = @transform_3, window_bounds = array<i64: 1, 8, 128>}]} {
    %c0 = arith.constant 0 : index
    %c0_0 = arith.constant 0 : index
    %0 = vector.load %arg3[%c0, %c0_0] : memref<10x32xf32, #tpu.memory_space<vmem>>, vector<10x32xf32>
    %c0_1 = arith.constant 0 : index
    %c0_2 = arith.constant 0 : index
    %1 = vector.load %arg1[%c0_1, %c0_2] : memref<32x1xi32, #tpu.memory_space<vmem>>, vector<32x1xi32>
    %2 = tpu.iota {dimensions = array<i32: 1>} : vector<32x10xi32>
    %3 = vector.broadcast %1 : vector<32x1xi32> to vector<32x10xi32>
    %4 = arith.cmpi eq, %3, %2 : vector<32x10xi32>
    %5 = arith.extui %4 : vector<32x10xi1> to vector<32x10xi32>
    %6 = arith.sitofp %5 : vector<32x10xi32> to vector<32x10xf32>
    %cst = arith.constant dense<0.000000e+00> : vector<32x32xf32>
    %7 = tpu.matmul %6, %0, %cst {dimension_numbers = #tpu.dot_dimension_numbers<[1], [0], [0], [1], [0, 0, 1, 1], [], []>} : vector<32x10xf32>, vector<10x32xf32>, vector<32x32xf32> -> vector<32x32xf32>
    %c0_3 = arith.constant 0 : index
    %c0_4 = arith.constant 0 : index
    %8 = vector.load %arg2[%c0_3, %c0_4] : memref<32x32xf32, #tpu.memory_space<vmem>>, vector<32x32xf32>
    %9 = arith.subf %8, %7 : vector<32x32xf32>
    %10 = arith.mulf %9, %9 : vector<32x32xf32>
    %cst_5 = arith.constant dense<0.000000e+00> : vector<32xf32>
    %11 = vector.multi_reduction <add>, %10, %cst_5 [1] : vector<32x32xf32> to vector<32xf32>
    %12 = vector.shape_cast %11 : vector<32xf32> to vector<32x1xf32>
    %cst_6 = arith.constant 9.99999996E-13 : f32
    %cst_7 = arith.constant 9.99999995E+11 : f32
    %13 = vector.broadcast %cst_6 : f32 to vector<32x1xf32>
    %14 = arith.maximumf %13, %12 : vector<32x1xf32>
    %15 = vector.broadcast %cst_7 : f32 to vector<32x1xf32>
    %16 = arith.minimumf %15, %14 : vector<32x1xf32>
    %c32_i32 = arith.constant 32 : i32
    %17 = arith.muli %arg0, %c32_i32 : i32
    %18 = tpu.iota {dimensions = array<i32: 0>} : vector<32x1xi32>
    %19 = vector.broadcast %17 : i32 to vector<32x1xi32>
    %20 = arith.addi %19, %18 : vector<32x1xi32>
    %c50_i32 = arith.constant 50 : i32
    %21 = vector.broadcast %c50_i32 : i32 to vector<32x1xi32>
    %22 = arith.cmpi slt, %20, %21 : vector<32x1xi32>
    %cst_8 = arith.constant 0.000000e+00 : f32
    %23 = vector.broadcast %cst_8 : f32 to vector<32x1xf32>
    %24 = arith.select %22, %16, %23 : vector<32x1xi1>, vector<32x1xf32>
    %25 = vector.shape_cast %24 : vector<32x1xf32> to vector<1x32x1xf32>
    %cst_9 = arith.constant dense<0.000000e+00> : vector<1xf32>
    %26 = vector.multi_reduction <add>, %25, %cst_9 [1, 2] : vector<1x32x1xf32> to vector<1xf32>
    %27 = vector.shape_cast %26 : vector<1xf32> to vector<1x1x1xf32>
    %28 = vector.extract %27[0, 0, 0] : f32 from vector<1x1x1xf32>
    %cst_10 = arith.constant 0.000000e+00 : f32
    %29 = vector.broadcast %cst_10 : f32 to vector<1x8x128xf32>
    %30 = vector.broadcast %28 : f32 to vector<1x8x128xf32>
    %31 = arith.addf %29, %30 : vector<1x8x128xf32>
    %c0_11 = arith.constant 0 : index
    %c0_12 = arith.constant 0 : index
    %c0_13 = arith.constant 0 : index
    %32 = vector.load %arg4[%c0_11, %c0_12, %c0_13] : memref<1x8x128xf32, #tpu.memory_space<vmem>>, vector<1x8x128xf32>
    tpu.vector_store %arg4[%c0_11, %c0_12, %c0_13], %31 {strides = array<i32>} : memref<1x8x128xf32, #tpu.memory_space<vmem>>, vector<1x8x128xf32>,
    return
  }
  func.func @transform_0(%arg0: i32) -> (i32, i32) {
    %c0_i32 = arith.constant 0 : i32
    %c0_i32_0 = arith.constant 0 : i32
    return %arg0, %c0_i32 : i32, i32
  }
  func.func @transform_1(%arg0: i32) -> (i32, i32) {
    %c0_i32 = arith.constant 0 : i32
    %c0_i32_0 = arith.constant 0 : i32
    return %arg0, %c0_i32 : i32, i32
  }
  func.func @transform_2(%arg0: i32) -> (i32, i32) {
    %c0_i32 = arith.constant 0 : i32
    %c0_i32_0 = arith.constant 0 : i32
    %c0_i32_1 = arith.constant 0 : i32
    return %c0_i32, %c0_i32_0 : i32, i32
  }
  func.func @transform_3(%arg0: i32) -> (i32, i32, i32) {
    %c0_i32 = arith.constant 0 : i32
    %c0_i32_0 = arith.constant 0 : i32
    %c0_i32_1 = arith.constant 0 : i32
    return %arg0, %c0_i32, %c0_i32_0 : i32, i32, i32
  }
}

</mosaic_0001>

<bundles_post_ra>
// kernel: tpu_custom_call.1
= control target key start
LH: loop header
LB: loop body
LE: loop exit
PB: predicated region body
PF: predicated region fallthrough
CT: control target
= control target key end

     0   :  { %8 = vsyncpa [#allocation3], 0  ;;  %s766_s0 = inlined_call_operand.vmem [shape: s32[64,1], index: 0, kind: input, shape index: {}]   ;;  %s767_s1 = inlined_call_operand.vmem [shape: f32[64,32], index: 1, kind: input, shape index: {}]   ;;  %s768_s2 = inlined_call_operand.vmem [shape: f32[10,32], index: 2, kind: input, shape index: {}]   ;;  %s769_s3 = inlined_call_operand.hbm [shape: f32[2,8,128], index: 3, kind: output, shape index: {}]  }
   0x1   :  { %10 = vsyncpa [#allocation3 + $0x1], 0  ;;  %s657_s12 = smov 0   ;;  %s659_s13 = smov 0  }
   0x2   :  { %s661_s14 = smov 0   ;;  %s663_s15 = smov 0  }
   0x3 LB: > { %s678_s16 = sadd.s32 4294967295, %s632_s15   ;;  %s484_s17 = sadd.s32 4294967294, %s632_s15   ;;  %s632_s15 = sphi %s663_s15, %s775_s15   ;;  %s628_s14 = sphi %s661_s14, %s774_s14   ;;  %s624_s13 = sphi %s659_s13, %s773_s13   ;;  %s620_s12 = sphi %s657_s12, %s772_s12  }
   0x4   : > { %s682_s18 = sadd.s32 1, %s632_s15   ;;  %s96_s19 = sadd.s32 1, %s628_s14 }
   0x5   : > { %s93_s20 = ssub.s32 %s632_s15, %s682_s18  ;;  %p106_p0 = scmp.ne.s32.totalorder %s628_s14, %s624_s13 }
   0x6   : > { %p94_p1 = scmp.eq.s32.totalorder %s93_s20, 0  ;;  %p107_p2 = scmp.eq.s32.totalorder %s678_s16, 1 }
   0x7   : > { %p112_p3 = scmp.ne.s32.totalorder %s624_s13, %s620_s12  ;;  %p113_p4 = scmp.eq.s32.totalorder %s484_s17, 1 }
   0x8   : > { %s693_s21 = scalar_select %p94_p1, %s628_s14, %s96_s19  }
   0x9   : > { %p695_p5 = por %p107_p2, %p106_p0  ;;  %p699_p6 = por %p113_p4, %p112_p3 }
   0xa   : > { %p487_p7 = scmp.ge.s32.totalorder %s632_s15, 1  ;;  %p152_p8 = scmp.lt.s32.totalorder %s632_s15, 3 }
   0xc   : > { %p153_p9 = pnand %p487_p7, %p152_p8 }
   0xd   : > { %s489_s24 = sshll.u32 (!%p153_p9), %s678_s16, 2  ;;  %s502_s9 = sshll.u32 (!%p153_p9), %s678_s16, 5 }
   0xe   : > { %156 = sbr.rel (%p153_p9) target bundleno = 721 (0x2d1), region = 32  ;;  %p182_p10 = scmp.lt.s32.totalorder (!%p153_p9), %s489_s24, 7 }
   0xf   : > { %s178_s10 = sand.u32 (!%p153_p9), 1, %s624_s13   ;;  %s504_s20 = sshll.u32 (!%p153_p9), %s678_s16, 7 }
  0x10   : > { %s488_s11 = sshll.u32 (!%p153_p9), %s178_s10, 3  ;;  %s400_s28 = scalar_lea.sflag (!%p153_p9), [#allocation3], %s178_s10 }
  0x11   : > { %s180_s17 = scalar_lea.vmem (!%p153_p9), [#allocation2], %s488_s11 }
  0x12   : > { %s413_s19 = sshll.u32 (!%p153_p9), %s180_s17, 4  ;;  %s728_s19 = int_to_ptr.vmem [resolvable:$true] %s413_s19 }
  0x13   : > { %v634_v0 = vmov 0   ;;  %s777_s24 = smov (!%p182_p10, %s489_s24), 7  ;;  %v194_v1 = vld [vmem:[%s768_s2 + $0x8] sm:$0x3]  ;;  %vm238_vm0 = vcmask 1041408   ;;  %v193_v4 = vld [vmem:[%s768_s2] sm:$0xff]  ;;  %v199_v7 = vlaneseq  ;;  %v366_v40 = vstv %s502_s9 }
  0x14   : > { %571 = vset.pattern.permute.xlu1 %v634_v0  ;;  %570 = vset.pattern.permute.xlu0 %v634_v0  ;;  %s490_s27 = sshll.u32 %s777_s24, 3  ;;  %vm225_vm1 = vcmask 80896   ;;  %v635_v11 = vmov 0.0   ;;  %vm339_vm6 = vcmask 261120   ;;  %vm379_vm10 = vcmask 7168   ;;  %s572_s29 = scalar_lea.vmem %s728_s19, 128 }
  0x15   : > { %513 = vmatprep.subr.msk.mxu0 %vm238_vm0, %v194_v1  ;;  %523 = vmatprep.subr.msk.mxu1 %vm238_vm0, %v194_v1  ;;  %s185_s30 = scalar_lea.vmem %s766_s0, %s490_s27  ;;  %v200_v8 = vand.u32 127, %v199_v7  ;;  %s191_s8 = scalar_lea.vmem %s767_s1, %s490_s27  ;;  %v362_v38 = vshrl.u32 %v199_v7, 7 }
  0x16   : > { %514 = vmatpush3.msk.msra.mxu0 %vm238_vm0, %v194_v1  ;;  %525 = vmatpush3.msk.msra.mxu1 %vm238_vm0, %v194_v1  ;;  %v197_v2 = vld [vmem:[%s185_s30 + $0x10] sm:$0xff]  ;;  %v195_v3 = vld [vmem:[%s185_s30] sm:$0xff]  ;;  %v198_v5 = vld [vmem:[%s185_s30 + $0x18] sm:$0xff]  ;;  %s411_s27 = scalar_lea.hbm %s769_s3, %s504_s20  ;;  %p573_p11 = scmp.ne.s32.totalorder %s728_s19, %s572_s29 }
  0x17   : > { %208 = vperm.xlu1 %571, %v197_v2   ;;  %202 = vperm.xlu0 %570, %v195_v3   ;;  %v196_v6 = vld [vmem:[%s185_s30 + $0x8] sm:$0xff]  ;;  %v327_v21 = vld [vmem:[%s191_s8] sm:$0xff]  ;;  %v329_v22 = vld [vmem:[%s191_s8 + $0x10] sm:$0xff]  ;;  %v363_v39 = vadd.s32 8, %v362_v38  ;;  %v367_v42 = vadd.s32 %v366_v40, %v362_v38  ;;  %v364_v43 = vadd.s32 16, %v362_v38  ;;  %v365_v49 = vadd.s32 24, %v362_v38 }
  0x18   : > { %515 = vmatprep.subr.mxu0 %v193_v4  ;;  %524 = vmatprep.subr.mxu1 %v193_v4  ;;  %v328_v18 = vld [vmem:[%s191_s8 + $0x8] sm:$0xff]  ;;  %v330_v29 = vld [vmem:[%s191_s8 + $0x18] sm:$0xff]  ;;  %p574_p12 = pnand %p573_p11, %p695_p5  ;;  %s636_s30 = smov [#allocation2]  }
  0x19   : > { %516 = vmatpush3.msra.mxu0 %v193_v4  ;;  %526 = vmatpush3.msra.mxu1 %v193_v4  ;;  %v368_v45 = vadd.s32 %v366_v40, %v363_v39  ;;  %vm371_vm7 = vcmp.lt.s32.totalorder %v367_v42, 50  ;;  %v369_v48 = vadd.s32 %v366_v40, %v364_v43  ;;  %v370_v55 = vadd.s32 %v366_v40, %v365_v49  ;;  %s576_s16 = sshll.u32 %s636_s30, 4  ;;  %s577_s16 = int_to_ptr.vmem [resolvable:$false] %s576_s16 }
  0x1a   : > { %p575_p13 = pneg %p574_p12  ;;  %s578_s4 = scalar_lea.vmem %s577_s16, 256 }
  0x1b   : > { %211 = vperm.xlu1 %571, %v198_v5   ;;  %205 = vperm.xlu0 %570, %v196_v6   ;;  %vm372_vm8 = vcmp.lt.s32.totalorder %v368_v45, 50  ;;  %vm373_vm9 = vcmp.lt.s32.totalorder %v369_v48, 50  ;;  %vm374_vm11 = vcmp.lt.s32.totalorder %v370_v55, 50  ;;  %p579_p0 = scmp.lt.s32.totalorder %s728_s19, %s577_s16  ;;  %p580_p1 = scmp.lt.s32.totalorder %s578_s4, %s572_s29 }
  0x1d   : > { %p581_p2 = por %p580_p1, %p579_p0 }
  0x1f   : > { %p582_p3 = pnand %p581_p2, %p575_p13 }
  0x92   : > { %v209_v9 = vpop.permute.xlu1 %208  ;;  %v203_v10 = vpop.permute.xlu0 %202 }
  0x93   : > { %vm215_vm2 = vcmp.eq.s32.totalorder %v209_v9, %v200_v8  ;;  %vm213_vm3 = vcmp.eq.s32.totalorder %v203_v10, %v200_v8 }
  0x94   : > { %v493_v12 = vsel %vm213_vm3, 1.0, %v635_v11  ;;  %v495_v13 = vsel %vm215_vm2, 1.0, %v635_v11 }
  0x95   : > { %517 = vmatprep.mubr.msk.f32.mxu0 %vm225_vm1, %v493_v12  ;;  %520 = vmatprep.mubr.msk.f32.mxu1 %vm225_vm1, %v495_v13 }
  0x96   : > { %v212_v14 = vpop.permute.xlu1 %211  ;;  %v206_v15 = vpop.permute.xlu0 %205 }
  0x97   : > { %vm216_vm4 = vcmp.eq.s32.totalorder %v212_v14, %v200_v8  ;;  %vm214_vm5 = vcmp.eq.s32.totalorder %v206_v15, %v200_v8 }
  0x98   : > { %v496_v16 = vsel %vm216_vm4, 1.0, %v635_v11  ;;  %v494_v17 = vsel %vm214_vm5, 1.0, %v635_v11 }
  0x99   : > { %518 = vmatmul.mubr.msk.f32.vlgmr.msra.gmra.mxu0 %vm225_vm1, %v494_v17  ;;  %521 = vmatmul.mubr.msk.f32.vlgmr.msra.gmra.mxu1 %vm225_vm1, %v496_v16 }
 0x159   : > { %v519_v19 = vpop.f32.mrf.mxu0  ;;  %v522_v20 = vpop.f32.mrf.mxu1 }
 0x15a   : > { %v332_v23 = vsub.f32 %v328_v18, %v519_v19  ;;  %v334_v32 = vsub.f32 %v330_v29, %v522_v20 }
 0x15b   : > { %v308_v24 = vpop.f32.mrf.mxu0  ;;  %v318_v25 = vpop.f32.mrf.mxu1 }
 0x15c   : > { %v336_v26 = vmul.f32 %v332_v23, %v332_v23  ;;  %v331_v27 = vsub.f32 %v327_v21, %v308_v24  ;;  %v333_v28 = vsub.f32 %v329_v22, %v318_v25  ;;  %v338_v35 = vmul.f32 %v334_v32, %v334_v32 }
 0x15e   : > { %v335_v30 = vmul.f32 %v331_v27, %v331_v27  ;;  %v343_v31 = vsel %vm339_vm6, %v336_v26, 0.0  ;;  %v337_v33 = vmul.f32 %v333_v28, %v333_v28  ;;  %v349_v37 = vsel %vm339_vm6, %v338_v35, 0.0 }
 0x15f   : > { %344 = vadd.xlane.f32.xlu1 %v343_v31 }
 0x160   : > { %v340_v34 = vsel %vm339_vm6, %v335_v30, 0.0  ;;  %v346_v36 = vsel %vm339_vm6, %v337_v33, 0.0 }
 0x161   : > { %341 = vadd.xlane.f32.xlu0 %v340_v34 }
 0x165   : > { %347 = vadd.xlane.f32.xlu0 %v346_v36 }
 0x169   : > { %350 = vadd.xlane.f32.xlu0 %v349_v37 }
 0x1e8   : > { %v345_v41 = vpop.xlane.xlu1 %344 }
 0x1e9   : > { %v353_v44 = vmax.f32 %v345_v41, 1e-12 }
 0x1ea   : > { %v342_v46 = vpop.xlane.xlu0 %341 }
 0x1eb   : > { %v352_v47 = vmax.f32 %v342_v46, 1e-12  ;;  %v357_v50 = vmin.f32 %v353_v44, 1e+12 }
 0x1ed   : > { %v356_v51 = vmin.f32 %v352_v47, 1e+12  ;;  %v376_v56 = vsel %vm372_vm8, %v357_v50, 0.0 }
 0x1ee   : > { %v348_v52 = vpop.xlane.xlu0 %347  ;;  %v381_v62 = vsel %vm379_vm10, %v376_v56, 0.0 }
 0x1ef   : > { %v375_v53 = vsel %vm371_vm7, %v356_v51, 0.0  ;;  %v354_v54 = vmax.f32 %v348_v52, 1e-12 }
 0x1f0   : > { %v380_v58 = vsel %vm379_vm10, %v375_v53, 0.0 }
 0x1f1   : > { %v358_v57 = vmin.f32 %v354_v54, 1e+12  ;;  %v382_v0 = vadd.f32 %v381_v62, %v380_v58 }
 0x1f2   : > { %v351_v59 = vpop.xlane.xlu0 %350 }
 0x1f3   : > { %v377_v60 = vsel %vm373_vm9, %v358_v57, 0.0  ;;  %v355_v61 = vmax.f32 %v351_v59, 1e-12 }
 0x1f4   : > { %v383_v63 = vsel %vm379_vm10, %v377_v60, 0.0 }
 0x1f5   : > { %v359_v1 = vmin.f32 %v355_v61, 1e+12  ;;  %v384_v3 = vadd.f32 %v383_v63, %v382_v0 }
 0x1f7   : > { %v378_v2 = vsel %vm374_vm11, %v359_v1, 0.0 }
 0x1f8   : > { %v385_v4 = vsel %vm379_vm10, %v378_v2, 0.0 }
 0x1f9   : > { %v386_v5 = vadd.f32 %v385_v4, %v384_v3 }
 0x1fb   : > { %387 = vadd.xlane.f32.xlu1 %v386_v5 }
 0x284   : > { %v388_v6 = vpop.xlane.xlu1 %387 }
 0x285   : > { %v389_v7 = vrot.slane %v388_v6, 4 }
 0x287   : > { %v390_v8 = vadd.f32 %v389_v7, %v388_v6 }
 0x289   : > { %v391_v9 = vrot.slane %v390_v8, 2 }
 0x28b   : > { %v392_v10 = vadd.f32 %v391_v9, %v390_v8 }
 0x28d   : > { %v393_v11 = vrot.slane %v392_v10, 1 }
 0x28f   : > { %v394_v12 = vadd.f32 %v393_v11, %v392_v10 }
 0x291   : > { %527 = vpush %v394_v12 }
 0x2c2   : > { %s528_s24 = spop %527 }
 0x2c3   : > { %v396_v13 = vstv %s528_s24 }
 0x2c4   : > { %398 = vst [vmem:[%s180_s17] sm:$0xff] %v396_v13 }
 0x2c5   : > { %585 = shalt.err (!%p582_p3)
}
 0x2c6   : > { %s586_s5 = scalar_lea.hbm %s411_s27, 128  ;;  %s590_s8 = scalar_lea.hbm %s769_s3, 256 }
 0x2c7   : > { %p587_p4 = scmp.ne.s32.totalorder %s411_s27, %s586_s5  ;;  %p591_p9 = scmp.lt.s32.totalorder %s411_s27, %s769_s3 }
 0x2c8   : > { %p592_p10 = scmp.lt.s32.totalorder %s590_s8, %s586_s5 }
 0x2c9   : > { %p588_p7 = pnand %p587_p4, %p695_p5 }
 0x2ca   : > { %p593_p11 = por %p592_p10, %p591_p9 }
 0x2cb   : > { %p589_p8 = pneg %p588_p7 }
 0x2cd   : > { %p594_p12 = pnand %p593_p11, %p589_p8 }
 0x2cf   : > { %597 = shalt.err (!%p594_p12)
}
 0x2d0   : > { %529 = dma.vmem_to_hbm [thread:$0]  (%p695_p5), %s728_s19, 128, %s411_s27, %s400_s28  }
 0x2d1 PF: > { %p535_p13 = scmp.ge.s32.totalorder %s632_s15, 2  ;;  %s425_s11 = sand.u32 1, %s620_s12  }
 0x2d2   : > { %s426_s17 = scalar_lea.sflag [#allocation3], %s425_s11 }
 0x2d3   : > { %p532_p0 = pnand %p535_p13, %p699_p6 }
 0x2d5   : > { %p533_p1 = pneg %p532_p0 }
 0x2d7   : > { %615 = dma.done.wait (%p533_p1), %s426_s17, 128  }
 0x2d8   : > { %617 = vsyncadd (%p533_p1), %s426_s17, 4294967168  ;;  %p13_p2 = scmp.ge.s32.totalorder %s682_s18, 4   ;;  %s772_s12 = smov %s624_s13 }
 0x2d9   : > { %s773_s13 = smov %s628_s14  ;;  %s774_s14 = smov %s693_s21 }
 0x2da   : > { %s775_s15 = smov %s682_s18  ;;  %15 = sbr.rel (!%p13_p2) target bundleno = 3 (0x3), region = 70 }
 0x2df   :  { %431 = vsyncpa [#allocation3], 1 }
 0x2e0   :  { %433 = vsyncpa [#allocation3 + $0x1], 1 }

</bundles_post_ra>
